<compile_context>
chip_gen: v7x
topology: tpu7x:2x2x1
jax: 0.10.0
libtpu: 0.0.40
codegen_flags: <defaults>
</compile_context>

<pallas_src>
import math

import jax
import jax.numpy as jnp
from jax import lax
from jax.experimental import pallas as pl
from jax.experimental.pallas import tpu as pltpu

FC1 = 256
FC2 = 256


def _round_up(x, m):
    return ((x + m - 1) // m) * m


def _critic_kernel(x_ref, w1_ref, b1_ref, w2_ref, b2_ref, w3_ref, b3_ref, o_ref):
    # fc1: bf16 x bf16 matmul, f32 accumulation on the MXU (K = input_dim, unpadded).
    x = x_ref[...].astype(jnp.bfloat16)                                   # [tb, D]
    h1 = jnp.dot(x, w1_ref[...], preferred_element_type=jnp.float32)      # [tb, 256]
    h1 = jnp.maximum(h1 + b1_ref[...], 0.0)                               # ReLU (f32, VPU)

    # fc2
    h2 = jnp.dot(h1.astype(jnp.bfloat16), w2_ref[...],
                 preferred_element_type=jnp.float32)                      # [tb, 256]
    h2 = jnp.maximum(h2 + b2_ref[...], 0.0)                               # ReLU (f32, VPU)

    # fc3 (256 -> 1), emitted lane-dense: [1,256] x [tb,256]^T -> [1, tb].
    v = lax.dot_general(w3_ref[...], h2, (((1,), (1,)), ((), ())),
                        preferred_element_type=jnp.float32)               # [1, tb]
    o_ref[...] = v + b3_ref[0, 0]                                         # scalar bias from SMEM


def _pick_batch_tile(B, tile_b):
    """Batch tile: full batch (rounded to sublanes) when small, else tile_b.

    For batches big enough to feed both v7x TensorCores, force >= 2 grid steps.
    """
    full = _round_up(max(B, 1), 8)
    if full > tile_b:
        return tile_b
    if B >= 512:                              # enough rows to split across 2 TCs
        return _round_up(pl.cdiv(full, 2), 8)
    return full


def critic_forward(state, params, *, tile_b=2048):
    """Fused critic MLP forward. state: [B, D] f32. Returns [B, 1] f32."""
    w1, b1, w2, b2, w3, b3 = params
    B, D = state.shape
    F1 = w1.shape[1]
    F2 = w2.shape[1]

    tb = _pick_batch_tile(B, tile_b)
    Bp = _round_up(B, tb)
    if Bp != B:
        state = jnp.pad(state, ((0, Bp - B), (0, 0)))      # tiny tail pad (batch only)
    grid_b = Bp // tb

    cost = pl.CostEstimate(
        flops=2 * Bp * (D * F1 + F1 * F2 + F2),
        transcendentals=0,
        bytes_accessed=(Bp * D * 4                         # f32 input (no feature pad)
                        + w1.size * 2 + w2.size * 2        # bf16 weights
                        + (b1.size + b2.size + w3.size + b3.size) * 4
                        + Bp * 4),                         # f32 output
    )

    out = pl.pallas_call(
        _critic_kernel,
        out_shape=jax.ShapeDtypeStruct((grid_b, tb), jnp.float32),   # lane-dense rows
        grid=(grid_b,),
        in_specs=[
            pl.BlockSpec((tb, D), lambda i: (i, 0)),                 # state tile (pipelined)
            pl.BlockSpec((D, F1), lambda i: (0, 0)),                 # w1 resident
            pl.BlockSpec((1, F1), lambda i: (0, 0)),                 # b1 resident
            pl.BlockSpec((F1, F2), lambda i: (0, 0)),                # w2 resident
            pl.BlockSpec((1, F2), lambda i: (0, 0)),                 # b2 resident
            pl.BlockSpec((1, F2), lambda i: (0, 0)),                 # w3 row resident
            pl.BlockSpec(memory_space=pltpu.MemorySpace.SMEM),       # b3 scalar in SMEM
        ],
        out_specs=pl.BlockSpec((1, tb), lambda i: (i, 0)),
        compiler_params=pltpu.CompilerParams(
            dimension_semantics=("parallel",),                       # megacore split on v7x
        ),
        cost_estimate=cost,
    )(state, w1, b1, w2, b2, w3, b3)

    # [grid_b, tb] row-major == batch order; drop padded tail rows, restore [B, 1].
    return out.reshape(-1)[:B].reshape(B, 1)


def init_params(key, input_dim, fc1_size=FC1, fc2_size=FC2):
    """Mimics nn.Linear default U(-1/sqrt(fan_in), 1/sqrt(fan_in)) init.

    Weights are stored [in, out] (transposed vs. PyTorch); w1/w2 are bf16 for
    the MXU path; w3 is an f32 row vector [1, fc2]; b3 is a (1, 1) f32 scalar.
    """
    keys = jax.random.split(key, 6)

    def linear(kw, kb, fan_in, fan_out):
        bound = 1.0 / math.sqrt(fan_in)
        w = jax.random.uniform(kw, (fan_in, fan_out), jnp.float32, -bound, bound)
        b = jax.random.uniform(kb, (1, fan_out), jnp.float32, -bound, bound)
        return w, b

    w1, b1 = linear(keys[0], keys[1], input_dim, fc1_size)
    w2, b2 = linear(keys[2], keys[3], fc1_size, fc2_size)
    w3, b3 = linear(keys[4], keys[5], fc2_size, 1)
    w3 = w3.reshape(1, fc2_size)                           # row vector for lane-dense fc3
    b3 = b3.reshape(1, 1)
    return (w1.astype(jnp.bfloat16), b1,
            w2.astype(jnp.bfloat16), b2,
            w3, b3)


def critic_forward_ref(state, params):
    """Pure-JAX reference (mirrors the kernel's bf16 matmul / f32 accumulate)."""
    w1, b1, w2, b2, w3, b3 = params
    x = state.astype(jnp.bfloat16)
    h1 = jnp.maximum(jnp.dot(x, w1, preferred_element_type=jnp.float32) + b1, 0.0)
    h2 = jnp.maximum(
        jnp.dot(h1.astype(jnp.bfloat16), w2, preferred_element_type=jnp.float32) + b2,
        0.0)
    return jnp.sum(h2 * w3, axis=-1, keepdims=True) + b3[0, 0]


if __name__ == "__main__":
    key = jax.random.PRNGKey(0)
    k_param, k_state = jax.random.split(key)

    batch = 2
    input_dim = 8          # observation-space size (CriticNetworkLSTM input_dim)

    params = init_params(k_param, input_dim)
    state = jax.random.normal(k_state, (batch, input_dim), jnp.float32)

    out = critic_forward(state, params)
    out = jax.block_until_ready(out)

    ref = critic_forward_ref(state, params)
    assert out.shape == (batch, 1), out.shape
    assert jnp.allclose(out, ref, atol=1e-3, rtol=1e-3), (out, ref)

    print("KERNEL_OK")
</pallas_src>

<mosaic_0001>
module attributes {stable_mosaic.version = 11 : i64} {
  func.func @_critic_kernel(%arg0: i32, %arg1: memref<8x8xf32, #tpu.memory_space<vmem>>, %arg2: memref<8x256xbf16, #tpu.memory_space<vmem>>, %arg3: memref<1x256xf32, #tpu.memory_space<vmem>>, %arg4: memref<256x256xbf16, #tpu.memory_space<vmem>>, %arg5: memref<1x256xf32, #tpu.memory_space<vmem>>, %arg6: memref<1x256xf32, #tpu.memory_space<vmem>>, %arg7: memref<1x1xf32, #tpu.memory_space<smem>>, %arg8: memref<1x8xf32, #tpu.memory_space<vmem>>) attributes {dimension_semantics = [#tpu.dimension_semantics<parallel>], iteration_bounds = array<i64: 1>, scalar_prefetch = 0 : i64, scratch_operands = 0 : i64, tpu.core_type = #tpu.core_type<tc>, window_params = [{transform_indices = @transform_0, window_bounds = array<i64: 8, 8>}, {pipeline_mode = #tpu.pipeline_mode<synchronous>, transform_indices = @transform_1, window_bounds = array<i64: 8, 256>}, {pipeline_mode = #tpu.pipeline_mode<synchronous>, transform_indices = @transform_2, window_bounds = array<i64: 1, 256>}, {pipeline_mode = #tpu.pipeline_mode<synchronous>, transform_indices = @transform_3, window_bounds = array<i64: 256, 256>}, {pipeline_mode = #tpu.pipeline_mode<synchronous>, transform_indices = @transform_4, window_bounds = array<i64: 1, 256>}, {pipeline_mode = #tpu.pipeline_mode<synchronous>, transform_indices = @transform_5, window_bounds = array<i64: 1, 256>}, {transform_indices = @transform_6, window_bounds = array<i64: 1, 1>}, {transform_indices = @transform_7, window_bounds = array<i64: 1, 8>}]} {
    %c0 = arith.constant 0 : index
    %c0_0 = arith.constant 0 : index
    %0 = vector.load %arg1[%c0, %c0_0] : memref<8x8xf32, #tpu.memory_space<vmem>>, vector<8x8xf32>
    %1 = arith.truncf %0 : vector<8x8xf32> to vector<8x8xbf16>
    %c0_1 = arith.constant 0 : index
    %c0_2 = arith.constant 0 : index
    %2 = vector.load %arg2[%c0_1, %c0_2] : memref<8x256xbf16, #tpu.memory_space<vmem>>, vector<8x256xbf16>
    %cst = arith.constant dense<0.000000e+00> : vector<8x256xf32>
    %3 = tpu.matmul %1, %2, %cst {dimension_numbers = #tpu.dot_dimension_numbers<[1], [0], [0], [1], [0, 0, 1, 1], [], []>} : vector<8x8xbf16>, vector<8x256xbf16>, vector<8x256xf32> -> vector<8x256xf32>
    %c0_3 = arith.constant 0 : index
    %c0_4 = arith.constant 0 : index
    %4 = vector.load %arg3[%c0_3, %c0_4] : memref<1x256xf32, #tpu.memory_space<vmem>>, vector<1x256xf32>
    %5 = vector.broadcast %4 : vector<1x256xf32> to vector<8x256xf32>
    %6 = arith.addf %3, %5 : vector<8x256xf32>
    %cst_5 = arith.constant 0.000000e+00 : f32
    %7 = vector.broadcast %cst_5 : f32 to vector<8x256xf32>
    %8 = arith.maximumf %6, %7 : vector<8x256xf32>
    %9 = arith.truncf %8 : vector<8x256xf32> to vector<8x256xbf16>
    %c0_6 = arith.constant 0 : index
    %c0_7 = arith.constant 0 : index
    %10 = vector.load %arg4[%c0_6, %c0_7] : memref<256x256xbf16, #tpu.memory_space<vmem>>, vector<256x256xbf16>
    %cst_8 = arith.constant dense<0.000000e+00> : vector<8x256xf32>
    %11 = tpu.matmul %9, %10, %cst_8 {dimension_numbers = #tpu.dot_dimension_numbers<[1], [0], [0], [1], [0, 0, 1, 1], [], []>} : vector<8x256xbf16>, vector<256x256xbf16>, vector<8x256xf32> -> vector<8x256xf32>
    %c0_9 = arith.constant 0 : index
    %c0_10 = arith.constant 0 : index
    %12 = vector.load %arg5[%c0_9, %c0_10] : memref<1x256xf32, #tpu.memory_space<vmem>>, vector<1x256xf32>
    %13 = vector.broadcast %12 : vector<1x256xf32> to vector<8x256xf32>
    %14 = arith.addf %11, %13 : vector<8x256xf32>
    %cst_11 = arith.constant 0.000000e+00 : f32
    %15 = vector.broadcast %cst_11 : f32 to vector<8x256xf32>
    %16 = arith.maximumf %14, %15 : vector<8x256xf32>
    %c0_12 = arith.constant 0 : index
    %c0_13 = arith.constant 0 : index
    %17 = vector.load %arg6[%c0_12, %c0_13] : memref<1x256xf32, #tpu.memory_space<vmem>>, vector<1x256xf32>
    %cst_14 = arith.constant dense<0.000000e+00> : vector<1x8xf32>
    %18 = tpu.matmul %17, %16, %cst_14 {dimension_numbers = #tpu.dot_dimension_numbers<[1], [1], [0], [0], [0, 0, 1, 0], [], []>} : vector<1x256xf32>, vector<8x256xf32>, vector<1x8xf32> -> vector<1x8xf32>
    %c0_15 = arith.constant 0 : index
    %c0_16 = arith.constant 0 : index
    %19 = memref.load %arg7[%c0_15, %c0_16] : memref<1x1xf32, #tpu.memory_space<smem>>
    %20 = vector.broadcast %19 : f32 to vector<1x8xf32>
    %21 = arith.addf %18, %20 : vector<1x8xf32>
    %c0_17 = arith.constant 0 : index
    %c0_18 = arith.constant 0 : index
    %22 = vector.load %arg8[%c0_17, %c0_18] : memref<1x8xf32, #tpu.memory_space<vmem>>, vector<1x8xf32>
    tpu.vector_store %arg8[%c0_17, %c0_18], %21 {strides = array<i32>} : memref<1x8xf32, #tpu.memory_space<vmem>>, vector<1x8xf32>,
    return
  }
  func.func @transform_0(%arg0: i32) -> (i32, i32) {
    %c0_i32 = arith.constant 0 : i32
    %c0_i32_0 = arith.constant 0 : i32
    return %arg0, %c0_i32 : i32, i32
  }
  func.func @transform_1(%arg0: i32) -> (i32, i32) {
    %c0_i32 = arith.constant 0 : i32
    %c0_i32_0 = arith.constant 0 : i32
    %c0_i32_1 = arith.constant 0 : i32
    return %c0_i32, %c0_i32_0 : i32, i32
  }
  func.func @transform_2(%arg0: i32) -> (i32, i32) {
    %c0_i32 = arith.constant 0 : i32
    %c0_i32_0 = arith.constant 0 : i32
    %c0_i32_1 = arith.constant 0 : i32
    return %c0_i32, %c0_i32_0 : i32, i32
  }
  func.func @transform_3(%arg0: i32) -> (i32, i32) {
    %c0_i32 = arith.constant 0 : i32
    %c0_i32_0 = arith.constant 0 : i32
    %c0_i32_1 = arith.constant 0 : i32
    return %c0_i32, %c0_i32_0 : i32, i32
  }
  func.func @transform_4(%arg0: i32) -> (i32, i32) {
    %c0_i32 = arith.constant 0 : i32
    %c0_i32_0 = arith.constant 0 : i32
    %c0_i32_1 = arith.constant 0 : i32
    return %c0_i32, %c0_i32_0 : i32, i32
  }
  func.func @transform_5(%arg0: i32) -> (i32, i32) {
    %c0_i32 = arith.constant 0 : i32
    %c0_i32_0 = arith.constant 0 : i32
    %c0_i32_1 = arith.constant 0 : i32
    return %c0_i32, %c0_i32_0 : i32, i32
  }
  func.func @transform_6(%arg0: i32) -> (i32, i32) {
    %c0_i32 = arith.constant 0 : i32
    %c0_i32_0 = arith.constant 0 : i32
    %c0_i32_1 = arith.constant 0 : i32
    return %c0_i32, %c0_i32_0 : i32, i32
  }
  func.func @transform_7(%arg0: i32) -> (i32, i32) {
    %c0_i32 = arith.constant 0 : i32
    %c0_i32_0 = arith.constant 0 : i32
    return %arg0, %c0_i32 : i32, i32
  }
}

</mosaic_0001>

<bundles_post_ra>
// kernel: tpu_custom_call.1
= control target key start
LH: loop header
LB: loop body
LE: loop exit
PB: predicated region body
PF: predicated region fallthrough
CT: control target
= control target key end

     0   :  { %13 = vsyncpa [#allocation4], 0  ;;  %s785_s0 = inlined_call_operand.hbm [shape: f32[8,8], index: 0, kind: input, shape index: {}]   ;;  %s786_s1 = inlined_call_operand.hbm [shape: bf16[8,256], index: 1, kind: input, shape index: {}]   ;;  %s787_s2 = inlined_call_operand.vmem [shape: f32[1,256], index: 2, kind: input, shape index: {}]   ;;  %s788_s3 = inlined_call_operand.hbm [shape: bf16[256,256], index: 3, kind: input, shape index: {}]   ;;  %s789_s4 = inlined_call_operand.vmem [shape: f32[1,256], index: 4, kind: input, shape index: {}]   ;;  %s790_s5 = inlined_call_operand.vmem [shape: f32[1,256], index: 5, kind: input, shape index: {}]   ;;  %s791_s6 = inlined_call_operand.<no memory space> [shape: f32[1,1], index: 6, kind: input, shape index: {}]   ;;  %s792_s7 = inlined_call_operand.hbm [shape: f32[1,8], index: 7, kind: output, shape index: {}]  }
   0x1   :  { %14 = vsyncpa [#allocation7], 0 }
   0x2   :  { %15 = vsyncpa [#allocation5], 0  ;;  %s678_s24 = smov [#allocation6]   ;;  %s679_s26 = smov [#allocation3]  }
   0x3   :  { %s32_s25 = sshll.u32 %s678_s24, 4  ;;  %s22_s27 = sshll.u32 %s679_s26, 4  ;;  %s33_s25 = int_to_ptr.vmem [resolvable:$true] %s32_s25  ;;  %s23_s27 = int_to_ptr.vmem [resolvable:$true] %s22_s27 }
   0x4   :  { %s584_s30 = scalar_lea.hbm %s786_s1, 128 }
   0x5   :  { %p585_p0 = scmp.ne.s32.totalorder %s786_s1, %s584_s30  ;;  %p588_p1 = scmp.lt.u32.totalorder %s584_s30, %s786_s1 }
   0x7   :  { %p590_p2 = pnand %p588_p1, %p585_p0 }
   0x9   :  { %593 = shalt.err (!%p590_p2)
}
   0xa   :  { %s594_s12 = scalar_lea.vmem %s33_s25, 128  ;;  %p599_p4 = scmp.lt.s32.totalorder %s33_s25, %s33_s25 }
   0xb   :  { %p595_p3 = scmp.ne.s32.totalorder %s33_s25, %s594_s12  ;;  %p600_p5 = scmp.lt.s32.totalorder %s594_s12, %s594_s12 }
   0xd   :  { %p601_p6 = por %p600_p5, %p599_p4 }
   0xf   :  { %p602_p7 = pnand %p601_p6, %p595_p3 }
  0x11   :  { %605 = shalt.err (!%p602_p7)
}
  0x12   :  { %35 = dma.hbm_to_vmem [thread:$0]  %s786_s1, 128, %s33_s25, [#allocation7]  }
  0x13   :  { %s606_s17 = scalar_lea.hbm %s785_s0, 128 }
  0x14   :  { %p607_p8 = scmp.ne.s32.totalorder %s785_s0, %s606_s17  ;;  %p610_p9 = scmp.lt.u32.totalorder %s606_s17, %s785_s0 }
  0x16   :  { %p612_p10 = pnand %p610_p9, %p607_p8 }
  0x18   :  { %615 = shalt.err (!%p612_p10)
}
  0x19   :  { %s616_s22 = scalar_lea.vmem %s23_s27, 128  ;;  %p621_p12 = scmp.lt.s32.totalorder %s23_s27, %s23_s27 }
  0x1a   :  { %p617_p11 = scmp.ne.s32.totalorder %s23_s27, %s616_s22  ;;  %p622_p13 = scmp.lt.s32.totalorder %s616_s22, %s616_s22 }
  0x1c   :  { %p623_p0 = por %p622_p13, %p621_p12 }
  0x1e   :  { %p624_p1 = pnand %p623_p0, %p617_p11 }
  0x20   :  { %627 = shalt.err (!%p624_p1)
}
  0x21   :  { %25 = dma.hbm_to_vmem [thread:$0]  %s785_s0, 128, %s23_s27, [#allocation4]  }
  0x22   :  { %s680_s24 = smov [#allocation8]   ;;  %s628_s29 = scalar_lea.hbm %s788_s3, 4096 }
  0x23   :  { %s43_s25 = sshll.u32 %s680_s24, 4  ;;  %p629_p2 = scmp.ne.s32.totalorder %s788_s3, %s628_s29  ;;  %s44_s25 = int_to_ptr.vmem [resolvable:$true] %s43_s25 }
  0x24   :  { %p632_p3 = scmp.lt.u32.totalorder %s628_s29, %s788_s3 }
  0x26   :  { %p634_p4 = pnand %p632_p3, %p629_p2 }
  0x28   :  { %637 = shalt.err (!%p634_p4)
}
  0x29   :  { %s638_s11 = scalar_lea.vmem %s44_s25, 4096  ;;  %p643_p6 = scmp.lt.s32.totalorder %s44_s25, %s44_s25 }
  0x2a   :  { %p639_p5 = scmp.ne.s32.totalorder %s44_s25, %s638_s11  ;;  %p644_p7 = scmp.lt.s32.totalorder %s638_s11, %s638_s11 }
  0x2c   :  { %p645_p8 = por %p644_p7, %p643_p6 }
  0x2e   :  { %p646_p9 = pnand %p645_p8, %p639_p5 }
  0x30   :  { %649 = shalt.err (!%p646_p9)
}
  0x31   :  { %s681_s0 = smov 128   ;;  %s682_s27 = smov 8  }
  0x32   :  { %49 = dma.hbm_to_vmem [thread:$0]  %s788_s3, 4096, %s44_s25, [#allocation7], %s681_s0, %s681_s0, %s682_s27  }
  0x33   :  { %672 = dma.done.wait [#allocation4], 128  }
  0x34   :  { %673 = vsyncadd [#allocation4], 4294967168 }
  0x35   :  { %674 = dma.done.wait [#allocation7], 4224  }
  0x36   :  { %675 = vsyncadd [#allocation7], 4294963072  ;;  %v683_v0 = vmov 0   ;;  %v68_v1 = vld [vmem:[#allocation6] sm:$0xff]  ;;  %vm90_vm0 = vcmask 1043456   ;;  %v66_v2 = vld [vmem:[#allocation3] sm:$0xff]  ;;  %v71_v39 = vlaneseq }
  0x37   :  { %129 = vmatprep.mubr.bf16.mxu0 %v683_v0  ;;  %v492_v3 = vcombine.high %v68_v1, %v68_v1  ;;  %v491_v4 = vcombine.low %v68_v1, %v68_v1  ;;  %v536_v5 = vld [vmem:[#allocation8 + $0x4] ss:$8 sps:$4 sm:$0xff]   ;;  %v538_v6 = vld [vmem:[#allocation8] ss:$8 sps:$4 sm:$0xff]   ;;  %v539_v7 = vld [vmem:[#allocation8 + $0x14] ss:$8 sps:$4 sm:$0xff]   ;;  %v67_v9 = vpack.c.bf16 %v66_v2, %v66_v2 }
  0x38   :  { %346 = vmatprep.subr.bf16.mxu1 %v536_v5  ;;  %vm86_vm1 = vcmask 64512   ;;  %v541_v10 = vld [vmem:[#allocation8 + $0x10] ss:$8 sps:$4 sm:$0xff]   ;;  %v542_v11 = vld [vmem:[#allocation8 + $0x24] ss:$8 sps:$4 sm:$0xff]   ;;  %v72_v40 = vshrl.u32 %v71_v39, 7 }
  0x39   :  { %493 = vmatprep.subr.msk.bf16.mxu0 %vm90_vm0, %v492_v3  ;;  %v92_v8 = vsel %vm90_vm0, %v491_v4, 0  ;;  %347 = vmatpush1.bf16.msra.mxu1 %v538_v6  ;;  %v544_v12 = vld [vmem:[#allocation8 + $0x20] ss:$8 sps:$4 sm:$0xff]   ;;  %v545_v13 = vld [vmem:[#allocation8 + $0x34] ss:$8 sps:$4 sm:$0xff]   ;;  %v391_v6 = vstv %s791_s6  ;;  %s684_s19 = smov [#allocation9]  }
  0x3a   :  { %98 = vmatpush1.bf16.msra.mxu0 %v92_v8  ;;  %348 = vmatprep.subr.bf16.mxu1 %v539_v7  ;;  %v547_v14 = vld [vmem:[#allocation8 + $0x30] ss:$8 sps:$4 sm:$0xff]   ;;  %v548_v15 = vld [vmem:[#allocation8 + $0x44] ss:$8 sps:$4 sm:$0xff]   ;;  %v550_v16 = vld [vmem:[#allocation8 + $0x40] ss:$8 sps:$4 sm:$0xff]  }
  0x3b   :  { %v551_v17 = vld [vmem:[#allocation8 + $0x54] ss:$8 sps:$4 sm:$0xff]   ;;  %v553_v18 = vld [vmem:[#allocation8 + $0x50] ss:$8 sps:$4 sm:$0xff]   ;;  %v554_v19 = vld [vmem:[#allocation8 + $0x64] ss:$8 sps:$4 sm:$0xff]  }
  0x3c   :  { %v556_v20 = vld [vmem:[#allocation8 + $0x60] ss:$8 sps:$4 sm:$0xff]   ;;  %v557_v21 = vld [vmem:[#allocation8 + $0x74] ss:$8 sps:$4 sm:$0xff]   ;;  %v559_v22 = vld [vmem:[#allocation8 + $0x70] ss:$8 sps:$4 sm:$0xff]  }
  0x3d   :  { %494 = vmatmul.mubr.msk.bf16.vlgmr.msra.gmra.mrb[0].mxu0 %vm86_vm1, %v67_v9  ;;  %349 = vmatpush1.bf16.msra.mxu1 %v541_v10  ;;  %v560_v23 = vld [vmem:[#allocation8 + $0x84] ss:$8 sps:$4 sm:$0xff]   ;;  %v562_v24 = vld [vmem:[#allocation8 + $0x80] ss:$8 sps:$4 sm:$0xff]   ;;  %v563_v25 = vld [vmem:[#allocation8 + $0x94] ss:$8 sps:$4 sm:$0xff]  }
  0x3e   :  { %350 = vmatprep.subr.bf16.mxu1 %v542_v11  ;;  %v565_v26 = vld [vmem:[#allocation8 + $0x90] ss:$8 sps:$4 sm:$0xff]   ;;  %v566_v27 = vld [vmem:[#allocation8 + $0xa4] ss:$8 sps:$4 sm:$0xff]   ;;  %v568_v28 = vld [vmem:[#allocation8 + $0xa0] ss:$8 sps:$4 sm:$0xff]  }
  0x3f   :  { %v569_v29 = vld [vmem:[#allocation8 + $0xb4] ss:$8 sps:$4 sm:$0xff]   ;;  %v571_v30 = vld [vmem:[#allocation8 + $0xb0] ss:$8 sps:$4 sm:$0xff]   ;;  %v572_v31 = vld [vmem:[#allocation8 + $0xc4] ss:$8 sps:$4 sm:$0xff]  }
  0x40   :  { %v574_v32 = vld [vmem:[#allocation8 + $0xc0] ss:$8 sps:$4 sm:$0xff]   ;;  %v575_v33 = vld [vmem:[#allocation8 + $0xd4] ss:$8 sps:$4 sm:$0xff]   ;;  %v577_v34 = vld [vmem:[#allocation8 + $0xd0] ss:$8 sps:$4 sm:$0xff]  }
  0x41   :  { %351 = vmatpush1.bf16.msra.mxu1 %v544_v12  ;;  %v578_v35 = vld [vmem:[#allocation8 + $0xe4] ss:$8 sps:$4 sm:$0xff]   ;;  %v580_v36 = vld [vmem:[#allocation8 + $0xe0] ss:$8 sps:$4 sm:$0xff]   ;;  %v581_v37 = vld [vmem:[#allocation8 + $0xf4] ss:$8 sps:$4 sm:$0xff]  }
  0x42   :  { %352 = vmatprep.subr.bf16.mxu1 %v545_v13  ;;  %v583_v38 = vld [vmem:[#allocation8 + $0xf0] ss:$8 sps:$4 sm:$0xff]   ;;  %v73_v41 = vsub.s32 0, %v72_v40  ;;  %v77_v43 = vsub.s32 1, %v72_v40  ;;  %vm473_vm2 = vcmask 57344  }
  0x43   :  { %v69_v42 = vld [vmem:[%s787_s2] sm:$0x3] }
  0x44   :  { %v74_v44 = vrot.slane %v69_v42, %v73_v41  ;;  %v78_v45 = vrot.slane %v69_v42, %v77_v43  ;;  %v389_v56 = vld [vmem:[%s790_s5] sm:$0x3] }
  0x45   :  { %353 = vmatpush1.bf16.msra.mxu1 %v547_v14  ;;  %v400_v57 = vrot.slane %v389_v56, %v77_v43  ;;  %v174_v58 = vld [vmem:[%s789_s4] sm:$0x3]  ;;  %v396_v5 = vrot.slane %v389_v56, %v73_v41  ;;  %s481_s4 = sshll.u32 %s684_s19, 4  ;;  %s482_s4 = int_to_ptr.vmem [resolvable:$true] %s481_s4 }
  0x46   :  { %354 = vmatprep.subr.bf16.mxu1 %v548_v15  ;;  %v179_v59 = vrot.slane %v174_v58, %v73_v41  ;;  %v183_v60 = vrot.slane %v174_v58, %v77_v43  ;;  %s650_s20 = scalar_lea.vmem %s482_s4, 16  ;;  %s654_s21 = scalar_lea.vmem %s482_s4, 32 }
  0x47   :  { %467 = vmatprep.mubr.f32.mxu0 %v400_v57  ;;  %p651_p10 = scmp.ne.s32.totalorder %s482_s4, %s650_s20  ;;  %p655_p11 = scmp.lt.s32.totalorder %s482_s4, %s482_s4 }
  0x48   :  { %p656_p12 = scmp.lt.s32.totalorder %s654_s21, %s650_s20 }
  0x49   :  { %355 = vmatpush1.bf16.msra.mxu1 %v550_v16 }
  0x4a   :  { %356 = vmatprep.subr.bf16.mxu1 %v551_v17  ;;  %p657_p13 = por %p656_p12, %p655_p11 }
  0x4c   :  { %p658_p0 = pnand %p657_p13, %p651_p10 }
  0x4d   :  { %357 = vmatpush1.bf16.msra.mxu1 %v553_v18 }
  0x4e   :  { %358 = vmatprep.subr.bf16.mxu1 %v554_v19 }
  0x51   :  { %359 = vmatpush1.bf16.msra.mxu1 %v556_v20 }
  0x52   :  { %360 = vmatprep.subr.bf16.mxu1 %v557_v21 }
  0x55   :  { %361 = vmatpush1.bf16.msra.mxu1 %v559_v22 }
  0x56   :  { %362 = vmatprep.subr.bf16.mxu1 %v560_v23 }
  0x59   :  { %363 = vmatpush1.bf16.msra.mxu1 %v562_v24 }
  0x5a   :  { %364 = vmatprep.subr.bf16.mxu1 %v563_v25 }
  0x5d   :  { %365 = vmatpush1.bf16.msra.mxu1 %v565_v26 }
  0x5e   :  { %366 = vmatprep.subr.bf16.mxu1 %v566_v27 }
  0x61   :  { %367 = vmatpush1.bf16.msra.mxu1 %v568_v28 }
  0x62   :  { %368 = vmatprep.subr.bf16.mxu1 %v569_v29 }
  0x65   :  { %369 = vmatpush1.bf16.msra.mxu1 %v571_v30 }
  0x66   :  { %370 = vmatprep.subr.bf16.mxu1 %v572_v31 }
  0x69   :  { %371 = vmatpush1.bf16.msra.mxu1 %v574_v32 }
  0x6a   :  { %372 = vmatprep.subr.bf16.mxu1 %v575_v33 }
  0x6d   :  { %373 = vmatpush1.bf16.msra.mxu1 %v577_v34 }
  0x6e   :  { %374 = vmatprep.subr.bf16.mxu1 %v578_v35 }
  0x71   :  { %375 = vmatpush1.bf16.msra.mxu1 %v580_v36 }
  0x72   :  { %376 = vmatprep.subr.bf16.mxu1 %v581_v37 }
  0x75   :  { %377 = vmatpush1.bf16.msra.mxu1 %v583_v38 }
 0x110   :  { %v131_v46 = vpop.f32.mrb[0].mxu0 }
 0x111   :  { %v132_v47 = vadd.f32 %v131_v46, %v74_v44  ;;  %v133_v48 = vpop.f32.mrb[1].mxu0 }
 0x112   :  { %v134_v49 = vadd.f32 %v133_v48, %v78_v45  ;;  %v135_v50 = vpop.f32.mrb[2].mxu0 }
 0x113   :  { %v138_v51 = vmax.f32 %v132_v47, 0.0  ;;  %v136_v52 = vpop.f32.mrb[3].mxu0 }
 0x114   :  { %v139_v53 = vmax.f32 %v134_v49, 0.0 }
 0x115   :  { %v140_v55 = vpack.c.bf16 %v138_v51, %v138_v51 }
 0x116   :  { %v141_v54 = vpack.c.bf16 %v139_v53, %v139_v53 }
 0x118   :  { %378 = vmatprep.mubr.bf16.mxu1 %v141_v54 }
 0x119   :  { %379 = vmatmul.mubr.bf16.vlgmr.msra.gmra.mrb[0].mxu1 %v140_v55 }
 0x1ec   :  { %v380_v61 = vpop.f32.mrb[0].mxu1 }
 0x1ed   :  { %v381_v62 = vadd.f32 %v380_v61, %v179_v59  ;;  %v382_v63 = vpop.f32.mrb[1].mxu1 }
 0x1ee   :  { %v383_v0 = vadd.f32 %v382_v63, %v183_v60  ;;  %v384_v1 = vpop.f32.mrb[2].mxu1 }
 0x1ef   :  { %v385_v2 = vpop.f32.mrb[3].mxu1  ;;  %v387_v4 = vmax.f32 %v381_v62, 0.0 }
 0x1f0   :  { %v388_v3 = vmax.f32 %v383_v0, 0.0 }
 0x1f2   :  { %403 = vmatprep.subr.mxu0 %v388_v3 }
 0x1f3   :  { %404 = vmatpush1.xpose.msra.mxu0 %v387_v4 }
 0x1f6   :  { %468 = vmatmul.mubr.f32.vlgmr.msra.gmra.mrb[4].mxu0 %v396_v5 }
 0x2c9   :  { %v469_v7 = vpop.f32.mrb[4].mxu0 }
 0x2ca   :  { %v470_v8 = vadd.f32 %v469_v7, %v391_v6  ;;  %v471_v9 = vpop.f32.mrb[5].mxu0 }
 0x2cc   :  { %474 = vst.msk [vmem:[#allocation9] sm:$0x1] %vm473_vm2, %v470_v8 }
 0x2cd   :  { %661 = shalt.err (!%p658_p0)
}
 0x2ce   :  { %s662_s6 = scalar_lea.hbm %s792_s7, 16 }
 0x2cf   :  { %p663_p1 = scmp.ne.s32.totalorder %s792_s7, %s662_s6  ;;  %p666_p2 = scmp.lt.u32.totalorder %s662_s6, %s792_s7 }
 0x2d1   :  { %p668_p3 = pnand %p666_p2, %p663_p1 }
 0x2d3   :  { %671 = shalt.err (!%p668_p3)
}
 0x2d4   :  { %484 = dma.vmem_to_hbm [thread:$0]  %s482_s4, 16, %s792_s7, [#allocation5]  }
 0x2d5   :  { %676 = dma.done.wait [#allocation5], 16  }
 0x2d6   :  { %677 = vsyncadd [#allocation5], 4294967280 }
 0x2d7   :  { %488 = vsyncpa [#allocation4], 1 }
 0x2d8   :  { %489 = vsyncpa [#allocation7], 1 }
 0x2d9   :  { %490 = vsyncpa [#allocation5], 1 }

</bundles_post_ra>
